<compile_context>
chip_gen: v6e
topology: v6e:2x2x1
jax: 0.10.0
libtpu: 0.0.40
codegen_flags: <defaults>
</compile_context>

<pallas_src>
import functools

import jax
import jax.numpy as jnp
from jax.experimental import pallas as pl
from jax.experimental.pallas import tpu as pltpu


_MM_DTYPE = jnp.bfloat16   # MXU operand dtype; accumulation stays float32.
_LANE = 128                # TPU lane width; kernel output padded to this.


def _gat_layer(h_in, w_all, proj, neg_mask, num_heads):
    """One MultiHeadGATLayer (merge='max') on in-VMEM values, heads batched.

    h_in     [N, F_in]     layer input (cast to bf16 for the MXU)
    w_all    [F_in, H*D]   per-head fc weights packed on the lane axis (bf16)
    proj     [2H, F_in]    folded score projections: rows 0..H-1 = W_h @ a_src_h,
                           rows H..2H-1 = W_h @ a_dst_h (bf16)
    neg_mask [N, N]        additive softmax mask, bf16: 0 on edges, -1e30 off
    returns  [N, D]        float32, max over heads
    """
    head_dim = w_all.shape[-1] // num_heads
    h_mm = h_in.astype(_MM_DTYPE)

    # Per-head linear transform: all heads in one lane-dense MXU matmul.
    z = jnp.dot(h_mm, w_all, preferred_element_type=jnp.float32)         # [N, H*D]
    z_mm = z.astype(_MM_DTYPE)

    # Attention scores for every head, directly from the layer input (fc
    # weights folded into `proj` in the wrapper): one tiny MXU matmul.
    s = jax.lax.dot_general(proj, h_mm, (((1,), (1,)), ((), ())),
                            preferred_element_type=jnp.float32)           # [2H, N]
    s_src = s[:num_heads]                                                  # [H, N]
    s_dst = s[num_heads:]                                                  # [H, N]

    # Head-batched edge scores + masked softmax (one slab, not H passes).
    e = s_dst[:, :, None] + s_src[:, None, :]                              # [H, N, N]
    e = jnp.maximum(e, 0.01 * e)                                           # leaky_relu (slope .01)
    e = e + neg_mask                                                       # mask non-edges (bf16->f32)
    m = jnp.max(e, axis=-1, keepdims=True)
    p = jnp.exp(e - m)                                                     # masked entries -> 0
    denom = jnp.sum(p, axis=-1, keepdims=True)                             # > 0 (self-loops)
    alpha = p * pl.reciprocal(denom, approx=True)                          # EUP, not a VALU divide
    alpha_mm = alpha.astype(_MM_DTYPE)

    # Per-head aggregation: tiny static loop (one MXU matmul + max per head).
    merged = None
    for hd in range(num_heads):
        z_h = z_mm[:, hd * head_dim:(hd + 1) * head_dim]                   # [N, D] bf16
        out_h = jnp.dot(alpha_mm[hd], z_h,
                        preferred_element_type=jnp.float32)                # [N, D] f32
        merged = out_h if merged is None else jnp.maximum(merged, out_h)
    return merged


def _gat_forward_kernel(h_ref, w1_ref, p1_ref, w2_ref, p2_ref, adj_ref, out_ref,
                        *, num_heads):
    # Additive softmax mask built once (bf16 halves the only persistent O(N^2)
    # temp) and shared by every head of both layers.
    adj = adj_ref[...].astype(jnp.float32)                    # int8 HBM stream -> f32 compare
    neg_mask = jnp.where(adj > 0, jnp.float32(0.0),
                         jnp.float32(-1e30)).astype(jnp.bfloat16)          # [N, N]

    # layer 1: num_heads heads, merge='max', then F.elu — fused here.
    h1 = _gat_layer(h_ref[...], w1_ref[...], p1_ref[...], neg_mask, num_heads)
    # ELU; clamp the exp argument so the discarded branch never overflows.
    h1 = jnp.where(h1 > 0, h1, jnp.exp(jnp.minimum(h1, 0.0)) - 1.0)

    # layer 2: single head (max over one head = identity), lane-padded output.
    h2 = _gat_layer(h1, w2_ref[...], p2_ref[...], neg_mask, 1)
    out_ref[...] = h2.astype(out_ref.dtype)                   # lane-dense [N, 128] store


def _pack_layer_params(w, a, pad_lanes=None):
    """Pack per-head params for lane-batched heads + folded score projections.

    w [H, F_in, D], a [H, D, 2] (col 0 = a_src, col 1 = a_dst)  ->
      w_all [F_in, H*D] bf16 (optionally zero-padded on lanes to `pad_lanes`)
      proj  [2H, F_in]  bf16 (rows 0..H-1 = W_h@a_src_h, H..2H-1 = W_h@a_dst_h)
    """
    num_heads, f_in, d = w.shape
    w_all = jnp.transpose(w, (1, 0, 2)).reshape(f_in, num_heads * d)
    if pad_lanes is not None and pad_lanes > num_heads * d:
        w_all = jnp.pad(w_all, ((0, 0), (0, pad_lanes - num_heads * d)))
    proj_src = jnp.einsum("hfd,hd->hf", w, a[:, :, 0])          # [H, F_in]
    proj_dst = jnp.einsum("hfd,hd->hf", w, a[:, :, 1])          # [H, F_in]
    proj = jnp.concatenate([proj_src, proj_dst], axis=0)        # [2H, F_in]
    return w_all.astype(_MM_DTYPE), proj.astype(_MM_DTYPE)


def gat_forward(params, h, adj):
    """GAT(in_dim, hidden_dim, num_heads, merge='max', aggregation='none')."""
    n, _ = h.shape
    num_heads, _, hidden_dim = params["w1"].shape
    out_lanes = ((hidden_dim + _LANE - 1) // _LANE) * _LANE     # lane-dense output width

    w1_all, p1 = _pack_layer_params(params["w1"], params["a1"])
    w2_all, p2 = _pack_layer_params(params["w2"], params["a2"], pad_lanes=out_lanes)
    h_bf16 = h.astype(_MM_DTYPE)                 # MXU operand anyway; halves HBM bytes
    adj_i8 = (adj > 0).astype(jnp.int8)          # mask only needs edge presence

    kernel = functools.partial(_gat_forward_kernel, num_heads=num_heads)
    vmem = pl.BlockSpec(memory_space=pltpu.MemorySpace.VMEM)
    out_padded = pl.pallas_call(
        kernel,
        out_shape=jax.ShapeDtypeStruct((n, out_lanes), jnp.float32),
        in_specs=[vmem] * 6,      # single invocation: whole (small) operands in VMEM
        out_specs=vmem,
        compiler_params=pltpu.CompilerParams(
            vmem_limit_bytes=48 * 1024 * 1024),  # explicit budget (v7x-safe, <64 MiB)
    )(h_bf16, w1_all, p1, w2_all, p2, adj_i8)
    return out_padded[:, :hidden_dim]            # slice the lane padding back off


def init_params(key, in_dim, hidden_dim, num_heads):
    """Deterministic init matching the nn.Linear shapes (Kaiming-uniform-like)."""
    k1, k2, k3, k4 = jax.random.split(key, 4)
    s_fc1 = 1.0 / jnp.sqrt(in_dim)
    s_fc2 = 1.0 / jnp.sqrt(hidden_dim)
    s_att = 1.0 / jnp.sqrt(2.0 * hidden_dim)
    # fc weights stored transposed: [heads, in_dim, out_dim]  (z = h @ W)
    w1 = jax.random.uniform(k1, (num_heads, in_dim, hidden_dim), jnp.float32, -s_fc1, s_fc1)
    # attn_fc weight [1, 2*out_dim] split into src/dst halves -> [heads, out_dim, 2]
    a1 = jax.random.uniform(k2, (num_heads, hidden_dim, 2), jnp.float32, -s_att, s_att)
    # layer2: in_dim = hidden_dim because merge != 'cat'
    w2 = jax.random.uniform(k3, (1, hidden_dim, hidden_dim), jnp.float32, -s_fc2, s_fc2)
    a2 = jax.random.uniform(k4, (1, hidden_dim, 2), jnp.float32, -s_att, s_att)
    return dict(w1=w1, a1=a1, w2=w2, a2=a2)


if __name__ == "__main__":
    N, in_dim, hidden_dim, num_heads = 16, 8, 32, 4

    key = jax.random.PRNGKey(0)
    k_h, k_adj, k_p = jax.random.split(key, 3)

    # node features [N, in_dim]
    h = jax.random.normal(k_h, (N, in_dim), dtype=jnp.float32)

    # random directed graph with self-loops; adj[dst, src]
    adj = (jax.random.uniform(k_adj, (N, N)) < 0.3).astype(jnp.float32)
    adj = jnp.maximum(adj, jnp.eye(N, dtype=jnp.float32))

    params = init_params(k_p, in_dim, hidden_dim, num_heads)

    out = jax.jit(gat_forward)(params, h, adj)
    out = jax.block_until_ready(out)

    assert out.shape == (N, hidden_dim), out.shape
    assert bool(jnp.all(jnp.isfinite(out)))
    print("KERNEL_OK")
</pallas_src>

<mosaic_0001>
module attributes {stable_mosaic.version = 11 : i64} {
  func.func @_gat_forward_kernel(%arg0: memref<16x8xbf16, #tpu.memory_space<vmem>>, %arg1: memref<8x128xbf16, #tpu.memory_space<vmem>>, %arg2: memref<8x8xbf16, #tpu.memory_space<vmem>>, %arg3: memref<32x128xbf16, #tpu.memory_space<vmem>>, %arg4: memref<2x32xbf16, #tpu.memory_space<vmem>>, %arg5: memref<16x16xi8, #tpu.memory_space<vmem>>, %arg6: memref<16x128xf32, #tpu.memory_space<vmem>>) attributes {dimension_semantics = [], scalar_prefetch = 0 : i64, scratch_operands = 0 : i64, tpu.core_type = #tpu.core_type<tc>} {
    %c0 = arith.constant 0 : index
    %c0_0 = arith.constant 0 : index
    %0 = vector.load %arg5[%c0, %c0_0] : memref<16x16xi8, #tpu.memory_space<vmem>>, vector<16x16xi8>
    %1 = arith.sitofp %0 : vector<16x16xi8> to vector<16x16xf32>
    %cst = arith.constant 0.000000e+00 : f32
    %2 = vector.broadcast %cst : f32 to vector<16x16xf32>
    %3 = arith.cmpf ogt, %1, %2 : vector<16x16xf32>
    %cst_1 = arith.constant 0.000000e+00 : f32
    %cst_2 = arith.constant -1.000000e+30 : f32
    %4 = vector.broadcast %cst_1 : f32 to vector<16x16xf32>
    %5 = vector.broadcast %cst_2 : f32 to vector<16x16xf32>
    %6 = arith.select %3, %4, %5 : vector<16x16xi1>, vector<16x16xf32>
    %7 = arith.truncf %6 : vector<16x16xf32> to vector<16x16xbf16>
    %c0_3 = arith.constant 0 : index
    %c0_4 = arith.constant 0 : index
    %8 = vector.load %arg0[%c0_3, %c0_4] : memref<16x8xbf16, #tpu.memory_space<vmem>>, vector<16x8xbf16>
    %c0_5 = arith.constant 0 : index
    %c0_6 = arith.constant 0 : index
    %9 = vector.load %arg1[%c0_5, %c0_6] : memref<8x128xbf16, #tpu.memory_space<vmem>>, vector<8x128xbf16>
    %c0_7 = arith.constant 0 : index
    %c0_8 = arith.constant 0 : index
    %10 = vector.load %arg2[%c0_7, %c0_8] : memref<8x8xbf16, #tpu.memory_space<vmem>>, vector<8x8xbf16>
    %cst_9 = arith.constant dense<0.000000e+00> : vector<16x128xf32>
    %11 = tpu.matmul %8, %9, %cst_9 {dimension_numbers = #tpu.dot_dimension_numbers<[1], [0], [0], [1], [0, 0, 1, 1], [], []>} : vector<16x8xbf16>, vector<8x128xbf16>, vector<16x128xf32> -> vector<16x128xf32>
    %12 = arith.truncf %11 : vector<16x128xf32> to vector<16x128xbf16>
    %cst_10 = arith.constant dense<0.000000e+00> : vector<8x16xf32>
    %13 = tpu.matmul %10, %8, %cst_10 {dimension_numbers = #tpu.dot_dimension_numbers<[1], [1], [0], [0], [0, 0, 1, 0], [], []>} : vector<8x8xbf16>, vector<16x8xbf16>, vector<8x16xf32> -> vector<8x16xf32>
    %14 = vector.extract_strided_slice %13 {offsets = [0, 0], sizes = [4, 16], strides = [1, 1]} : vector<8x16xf32> to vector<4x16xf32>
    %15 = vector.extract_strided_slice %13 {offsets = [4, 0], sizes = [4, 16], strides = [1, 1]} : vector<8x16xf32> to vector<4x16xf32>
    %16 = vector.shape_cast %15 : vector<4x16xf32> to vector<4x16x1xf32>
    %17 = vector.shape_cast %14 : vector<4x16xf32> to vector<4x1x16xf32>
    %18 = vector.broadcast %16 : vector<4x16x1xf32> to vector<4x16x16xf32>
    %19 = vector.broadcast %17 : vector<4x1x16xf32> to vector<4x16x16xf32>
    %20 = arith.addf %18, %19 : vector<4x16x16xf32>
    %cst_11 = arith.constant 0.00999999977 : f32
    %21 = vector.broadcast %cst_11 : f32 to vector<4x16x16xf32>
    %22 = arith.mulf %21, %20 : vector<4x16x16xf32>
    %23 = arith.maximumf %20, %22 : vector<4x16x16xf32>
    %24 = arith.extf %7 : vector<16x16xbf16> to vector<16x16xf32>
    %25 = vector.shape_cast %24 : vector<16x16xf32> to vector<1x16x16xf32>
    %26 = vector.broadcast %25 : vector<1x16x16xf32> to vector<4x16x16xf32>
    %27 = arith.addf %23, %26 : vector<4x16x16xf32>
    %cst_12 = arith.constant dense<0xFF800000> : vector<4x16xf32>
    %28 = vector.multi_reduction <maximumf>, %27, %cst_12 [2] : vector<4x16x16xf32> to vector<4x16xf32>
    %29 = vector.shape_cast %28 : vector<4x16xf32> to vector<4x16x1xf32>
    %30 = vector.broadcast %29 : vector<4x16x1xf32> to vector<4x16x16xf32>
    %31 = arith.subf %27, %30 : vector<4x16x16xf32>
    %32 = math.exp %31 : vector<4x16x16xf32>
    %cst_13 = arith.constant dense<0.000000e+00> : vector<4x16xf32>
    %33 = vector.multi_reduction <add>, %32, %cst_13 [2] : vector<4x16x16xf32> to vector<4x16xf32>
    %34 = vector.shape_cast %33 : vector<4x16xf32> to vector<4x16x1xf32>
    %35 = tpu.reciprocal %34 {approx = true} : vector<4x16x1xf32> -> vector<4x16x1xf32>
    %36 = vector.broadcast %35 : vector<4x16x1xf32> to vector<4x16x16xf32>
    %37 = arith.mulf %32, %36 : vector<4x16x16xf32>
    %38 = arith.truncf %37 : vector<4x16x16xf32> to vector<4x16x16xbf16>
    %39 = vector.extract_strided_slice %12 {offsets = [0, 0], sizes = [16, 32], strides = [1, 1]} : vector<16x128xbf16> to vector<16x32xbf16>
    %40 = vector.extract_strided_slice %38 {offsets = [0, 0, 0], sizes = [1, 16, 16], strides = [1, 1, 1]} : vector<4x16x16xbf16> to vector<1x16x16xbf16>
    %41 = vector.shape_cast %40 : vector<1x16x16xbf16> to vector<16x16xbf16>
    %cst_14 = arith.constant dense<0.000000e+00> : vector<16x32xf32>
    %42 = tpu.matmul %41, %39, %cst_14 {dimension_numbers = #tpu.dot_dimension_numbers<[1], [0], [0], [1], [0, 0, 1, 1], [], []>} : vector<16x16xbf16>, vector<16x32xbf16>, vector<16x32xf32> -> vector<16x32xf32>
    %43 = vector.extract_strided_slice %12 {offsets = [0, 32], sizes = [16, 32], strides = [1, 1]} : vector<16x128xbf16> to vector<16x32xbf16>
    %44 = vector.extract_strided_slice %38 {offsets = [1, 0, 0], sizes = [1, 16, 16], strides = [1, 1, 1]} : vector<4x16x16xbf16> to vector<1x16x16xbf16>
    %45 = vector.shape_cast %44 : vector<1x16x16xbf16> to vector<16x16xbf16>
    %cst_15 = arith.constant dense<0.000000e+00> : vector<16x32xf32>
    %46 = tpu.matmul %45, %43, %cst_15 {dimension_numbers = #tpu.dot_dimension_numbers<[1], [0], [0], [1], [0, 0, 1, 1], [], []>} : vector<16x16xbf16>, vector<16x32xbf16>, vector<16x32xf32> -> vector<16x32xf32>
    %47 = arith.maximumf %42, %46 : vector<16x32xf32>
    %48 = vector.extract_strided_slice %12 {offsets = [0, 64], sizes = [16, 32], strides = [1, 1]} : vector<16x128xbf16> to vector<16x32xbf16>
    %49 = vector.extract_strided_slice %38 {offsets = [2, 0, 0], sizes = [1, 16, 16], strides = [1, 1, 1]} : vector<4x16x16xbf16> to vector<1x16x16xbf16>
    %50 = vector.shape_cast %49 : vector<1x16x16xbf16> to vector<16x16xbf16>
    %cst_16 = arith.constant dense<0.000000e+00> : vector<16x32xf32>
    %51 = tpu.matmul %50, %48, %cst_16 {dimension_numbers = #tpu.dot_dimension_numbers<[1], [0], [0], [1], [0, 0, 1, 1], [], []>} : vector<16x16xbf16>, vector<16x32xbf16>, vector<16x32xf32> -> vector<16x32xf32>
    %52 = arith.maximumf %47, %51 : vector<16x32xf32>
    %53 = vector.extract_strided_slice %12 {offsets = [0, 96], sizes = [16, 32], strides = [1, 1]} : vector<16x128xbf16> to vector<16x32xbf16>
    %54 = vector.extract_strided_slice %38 {offsets = [3, 0, 0], sizes = [1, 16, 16], strides = [1, 1, 1]} : vector<4x16x16xbf16> to vector<1x16x16xbf16>
    %55 = vector.shape_cast %54 : vector<1x16x16xbf16> to vector<16x16xbf16>
    %cst_17 = arith.constant dense<0.000000e+00> : vector<16x32xf32>
    %56 = tpu.matmul %55, %53, %cst_17 {dimension_numbers = #tpu.dot_dimension_numbers<[1], [0], [0], [1], [0, 0, 1, 1], [], []>} : vector<16x16xbf16>, vector<16x32xbf16>, vector<16x32xf32> -> vector<16x32xf32>
    %57 = arith.maximumf %52, %56 : vector<16x32xf32>
    %cst_18 = arith.constant 0.000000e+00 : f32
    %58 = vector.broadcast %cst_18 : f32 to vector<16x32xf32>
    %59 = arith.cmpf ogt, %57, %58 : vector<16x32xf32>
    %cst_19 = arith.constant 0.000000e+00 : f32
    %60 = vector.broadcast %cst_19 : f32 to vector<16x32xf32>
    %61 = arith.minimumf %57, %60 : vector<16x32xf32>
    %62 = math.exp %61 : vector<16x32xf32>
    %cst_20 = arith.constant 1.000000e+00 : f32
    %63 = vector.broadcast %cst_20 : f32 to vector<16x32xf32>
    %64 = arith.subf %62, %63 : vector<16x32xf32>
    %65 = arith.select %59, %57, %64 : vector<16x32xi1>, vector<16x32xf32>
    %c0_21 = arith.constant 0 : index
    %c0_22 = arith.constant 0 : index
    %66 = vector.load %arg3[%c0_21, %c0_22] : memref<32x128xbf16, #tpu.memory_space<vmem>>, vector<32x128xbf16>
    %c0_23 = arith.constant 0 : index
    %c0_24 = arith.constant 0 : index
    %67 = vector.load %arg4[%c0_23, %c0_24] : memref<2x32xbf16, #tpu.memory_space<vmem>>, vector<2x32xbf16>
    %68 = arith.truncf %65 : vector<16x32xf32> to vector<16x32xbf16>
    %cst_25 = arith.constant dense<0.000000e+00> : vector<16x128xf32>
    %69 = tpu.matmul %68, %66, %cst_25 {dimension_numbers = #tpu.dot_dimension_numbers<[1], [0], [0], [1], [0, 0, 1, 1], [], []>} : vector<16x32xbf16>, vector<32x128xbf16>, vector<16x128xf32> -> vector<16x128xf32>
    %70 = arith.truncf %69 : vector<16x128xf32> to vector<16x128xbf16>
    %cst_26 = arith.constant dense<0.000000e+00> : vector<2x16xf32>
    %71 = tpu.matmul %67, %68, %cst_26 {dimension_numbers = #tpu.dot_dimension_numbers<[1], [1], [0], [0], [0, 0, 1, 0], [], []>} : vector<2x32xbf16>, vector<16x32xbf16>, vector<2x16xf32> -> vector<2x16xf32>
    %72 = vector.extract_strided_slice %71 {offsets = [0, 0], sizes = [1, 16], strides = [1, 1]} : vector<2x16xf32> to vector<1x16xf32>
    %73 = vector.extract_strided_slice %71 {offsets = [1, 0], sizes = [1, 16], strides = [1, 1]} : vector<2x16xf32> to vector<1x16xf32>
    %74 = vector.shape_cast %73 : vector<1x16xf32> to vector<1x16x1xf32>
    %75 = vector.shape_cast %72 : vector<1x16xf32> to vector<1x1x16xf32>
    %76 = vector.broadcast %74 : vector<1x16x1xf32> to vector<1x16x16xf32>
    %77 = vector.broadcast %75 : vector<1x1x16xf32> to vector<1x16x16xf32>
    %78 = arith.addf %76, %77 : vector<1x16x16xf32>
    %cst_27 = arith.constant 0.00999999977 : f32
    %79 = vector.broadcast %cst_27 : f32 to vector<1x16x16xf32>
    %80 = arith.mulf %79, %78 : vector<1x16x16xf32>
    %81 = arith.maximumf %78, %80 : vector<1x16x16xf32>
    %82 = arith.extf %7 : vector<16x16xbf16> to vector<16x16xf32>
    %83 = vector.shape_cast %82 : vector<16x16xf32> to vector<1x16x16xf32>
    %84 = arith.addf %81, %83 : vector<1x16x16xf32>
    %cst_28 = arith.constant dense<0xFF800000> : vector<1x16xf32>
    %85 = vector.multi_reduction <maximumf>, %84, %cst_28 [2] : vector<1x16x16xf32> to vector<1x16xf32>
    %86 = vector.shape_cast %85 : vector<1x16xf32> to vector<1x16x1xf32>
    %87 = vector.broadcast %86 : vector<1x16x1xf32> to vector<1x16x16xf32>
    %88 = arith.subf %84, %87 : vector<1x16x16xf32>
    %89 = math.exp %88 : vector<1x16x16xf32>
    %cst_29 = arith.constant dense<0.000000e+00> : vector<1x16xf32>
    %90 = vector.multi_reduction <add>, %89, %cst_29 [2] : vector<1x16x16xf32> to vector<1x16xf32>
    %91 = vector.shape_cast %90 : vector<1x16xf32> to vector<1x16x1xf32>
    %92 = tpu.reciprocal %91 {approx = true} : vector<1x16x1xf32> -> vector<1x16x1xf32>
    %93 = vector.broadcast %92 : vector<1x16x1xf32> to vector<1x16x16xf32>
    %94 = arith.mulf %89, %93 : vector<1x16x16xf32>
    %95 = arith.truncf %94 : vector<1x16x16xf32> to vector<1x16x16xbf16>
    %96 = vector.shape_cast %95 : vector<1x16x16xbf16> to vector<16x16xbf16>
    %cst_30 = arith.constant dense<0.000000e+00> : vector<16x128xf32>
    %97 = tpu.matmul %96, %70, %cst_30 {dimension_numbers = #tpu.dot_dimension_numbers<[1], [0], [0], [1], [0, 0, 1, 1], [], []>} : vector<16x16xbf16>, vector<16x128xbf16>, vector<16x128xf32> -> vector<16x128xf32>
    %c0_31 = arith.constant 0 : index
    %c0_32 = arith.constant 0 : index
    %98 = vector.load %arg6[%c0_31, %c0_32] : memref<16x128xf32, #tpu.memory_space<vmem>>, vector<16x128xf32>
    tpu.vector_store %arg6[%c0_31, %c0_32], %97 {strides = array<i32>} : memref<16x128xf32, #tpu.memory_space<vmem>>, vector<16x128xf32>,
    return
  }
}

</mosaic_0001>

<bundles_post_ra>
// kernel: gat_forward.1
= control target key start
LH: loop header
LB: loop body
LE: loop exit
PB: predicated region body
PF: predicated region fallthrough
CT: control target
= control target key end

     0   :  { %v945_v1 = vmov 0.0   ;;  %vm45_vm0 = vcmask 64512   ;;  %vm946_vm1 = vmmov 0   ;;  %s1106_s0 = inlined_call_operand.vmem [shape: bf16[16,8], index: 0, kind: input, shape index: {}]   ;;  %s1107_s1 = inlined_call_operand.vmem [shape: bf16[8,128], index: 1, kind: input, shape index: {}]   ;;  %s1108_s2 = inlined_call_operand.vmem [shape: bf16[8,8], index: 2, kind: input, shape index: {}]   ;;  %s1109_s3 = inlined_call_operand.vmem [shape: bf16[32,128], index: 3, kind: input, shape index: {}]   ;;  %s1110_s4 = inlined_call_operand.vmem [shape: bf16[2,32], index: 4, kind: input, shape index: {}]   ;;  %s1111_s5 = inlined_call_operand.vmem [shape: s8[16,16], index: 5, kind: input, shape index: {}]   ;;  %s1112_s6 = inlined_call_operand.hbm [shape: f32[16,128], index: 6, kind: output, shape index: {}]  }
   0x1   :  { %v876_v0 = vld [vmem:[%s1106_s0] sm:$0xff]   ;;  %816 = vmatprep.subr.bf16.mxu1 %v945_v1  ;;  %810 = vmatprep.subr.bf16.mxu0 %v945_v1 }
   0x2   :  { %v47_v2 = vsel %vm45_vm0, %v876_v0, 0  ;;  %818 = vmatprep.mubr.msk.bf16.mxu1 %vm946_vm1, %v945_v1  ;;  %812 = vmatprep.mubr.msk.bf16.mxu0 %vm946_vm1, %v945_v1 }
   0x3   :  { %817 = vmatpush3.bf16.xpose.msra.mxu1 %v47_v2 }
   0x4   :  { %11 = vsyncpa [#allocation3], 0  ;;  %828 = vmatprep.subr.bf16.mxu1 %v945_v1  ;;  %v39_v3 = vld [vmem:[%s1108_s2] sm:$0xf]  ;;  %vm49_vm2 = vcmask 1043456   ;;  %v138_v6 = vlaneseq  ;;  %vm261_vm5 = vcmask 130048  }
   0x5   :  { %v38_v4 = vld [vmem:[%s1107_s1] sm:$0xf]  ;;  %v947_v25 = vmov 1966171168   ;;  %v948_v39 = vmov -1e+30  }
   0x6   :  { %v51_v5 = vsel %vm49_vm2, %v38_v4, 0  ;;  %v1014_v7 = vshrl.u32 %v138_v6, 7  ;;  %v184_v26 = vunpack.c.l.s4 %v947_v25  ;;  %v788_v28 = vld [vmem:[%s1111_s5] sm:$0xf]   ;;  %s949_s5 = smov 96   ;;  %s950_s26 = smov 32  }
   0x7   :  { %811 = vmatpush3.bf16.msra.mxu0 %v51_v5  ;;  %v789_v30 = vunpack.c.0.s8 %v788_v28  ;;  %v790_v31 = vunpack.c.1.s8 %v788_v28  ;;  %s951_s27 = smov 64   ;;  %vm576_vm8 = vcmask 261120  }
   0x8   :  { %822 = vmatprep.subr.bf16.mxu0 %v945_v1  ;;  %v151_v8 = vsub.s32 5, %v1014_v7  ;;  %v140_v9 = vsub.s32 4, %v1014_v7  ;;  %v162_v15 = vsub.s32 6, %v1014_v7  ;;  %v173_v18 = vsub.s32 7, %v1014_v7 }
   0x9   :  { %v185_v27 = vunpack.c.0.s8 %v184_v26  ;;  %v29_v33 = vcvt.s32.f32 %v789_v30  ;;  %v30_v34 = vcvt.s32.f32 %v790_v31  ;;  %v1029_v37 = vsub.s32 0, %v1014_v7 }
   0xa   :  { %819 = vmatmul.mubr.msk.bf16.vlgmr.msra.gmra.mxu1 %vm45_vm0, %v39_v3  ;;  %813 = vmatmul.mubr.msk.bf16.vlgmr.msra.gmra.mxu0 %vm45_vm0, %v876_v0 }
   0xb   :  { %830 = vmatprep.mubr.msk.bf16.mxu1 %vm946_vm1, %v945_v1  ;;  %824 = vmatprep.mubr.msk.bf16.mxu0 %vm946_vm1, %v945_v1  ;;  %v188_v29 = vsub.s32 %v185_v27, %v1014_v7  ;;  %vm31_vm3 = vcmp.gt.f32.partialorder %v29_v33, 0.0  ;;  %vm32_vm4 = vcmp.gt.f32.partialorder %v30_v34, 0.0 }
   0xc   :  { %v33_v40 = vsel %vm31_vm3, 0.0, %v948_v39  ;;  %v34_v41 = vsel %vm32_vm4, 0.0, %v948_v39 }
   0xd   :  { %v35_v44 = vpack.c.bf16 %v34_v41, %v33_v40 }
   0xf   :  { %v1033_v52 = vunpack.c.l.bf16 %v35_v44  ;;  %v1036_v60 = vunpack.c.h.bf16 %v35_v44 }
  0xca   :  { %v132_v10 = vpop.f32.mrf.mxu1  ;;  %v87_v20 = vpop.f32.mrf.mxu0 }
  0xcb   :  { %v152_v11 = vrot.slane %v132_v10, %v151_v8  ;;  %v141_v12 = vrot.slane %v132_v10, %v140_v9  ;;  %v163_v17 = vrot.slane %v132_v10, %v162_v15  ;;  %v174_v19 = vrot.slane %v132_v10, %v173_v18 }
  0xcc   :  { %v820_v13 = vpop.f32.mrf.mxu1  ;;  %v814_v21 = vpop.f32.mrf.mxu0  ;;  %v189_v32 = vrot.slane %v132_v10, %v188_v29 }
  0xcd   :  { %154 = vbcast.lane.b32.xlu1 %v152_v11, 256  ;;  %143 = vbcast.lane.b32.xlu0 %v141_v12, 256 }
  0xce   :  { %v135_v14 = vpop.f32.mrf.mxu1  ;;  %v90_v22 = vpop.f32.mrf.mxu0  ;;  %v190_v35 = vcombine.high %v189_v32, %v189_v32  ;;  %v197_v38 = vrot.slane %v189_v32, %v188_v29 }
  0xcf   :  { %v1020_v23 = vpack.c.bf16 %v90_v22, %v87_v20 }
  0xd0   :  { %v821_v16 = vpop.f32.mrf.mxu1  ;;  %v815_v24 = vpop.f32.mrf.mxu0  ;;  %v204_v36 = vrot.slane %v190_v35, %v188_v29  ;;  %v210_v43 = vrot.slane %v197_v38, %v1029_v37  ;;  %v205_v49 = vcombine.high %v197_v38, %v197_v38 }
  0xd1   :  { %158 = vbcast.lane.b32.xlu1 %v152_v11, 264  ;;  %147 = vbcast.lane.b32.xlu0 %v141_v12, 264 }
  0xd2   :  { %823 = vmatpush3.bf16.msra.mxu0 %v1020_v23  ;;  %v214_v42 = vrot.slane %v204_v36, %v1029_v37  ;;  %v218_v59 = vrot.slane %v205_v49, %v1029_v37  ;;  %v206_v0 = vcombine.high %v204_v36, %v204_v36 }
  0xd3   :  { %834 = vmatprep.subr.bf16.mxu0 %v945_v1 }
  0xd4   :  { %v222_v13 = vrot.slane %v206_v0, %v1029_v37 }
  0xd5   :  { %169 = vbcast.lane.b32.xlu1 %v163_v17, 264  ;;  %165 = vbcast.lane.b32.xlu0 %v163_v17, 256 }
  0xd9   :  { %180 = vbcast.lane.b32.xlu1 %v174_v19, 264  ;;  %176 = vbcast.lane.b32.xlu0 %v174_v19, 256 }
 0x13f   :  { %v155_v45 = vpop.permute.xlu1 %154  ;;  %v144_v46 = vpop.permute.xlu0 %143 }
 0x140   :  { %v229_v47 = vadd.f32 %v214_v42, %v155_v45  ;;  %v227_v48 = vadd.f32 %v210_v43, %v144_v46 }
 0x142   :  { %v237_v50 = vmul.f32 0.01, %v229_v47  ;;  %v235_v51 = vmul.f32 0.01, %v227_v48 }
 0x143   :  { %v159_v53 = vpop.permute.xlu1 %158  ;;  %v148_v54 = vpop.permute.xlu0 %147 }
 0x144   :  { %v243_v55 = vmax.f32 %v227_v48, %v235_v51  ;;  %v230_v56 = vadd.f32 %v214_v42, %v159_v53  ;;  %v228_v57 = vadd.f32 %v210_v43, %v148_v54  ;;  %v245_v58 = vmax.f32 %v229_v47, %v237_v50 }
 0x146   :  { %v238_v61 = vmul.f32 0.01, %v230_v56  ;;  %v236_v62 = vmul.f32 0.01, %v228_v57  ;;  %v253_v63 = vadd.f32 %v1033_v52, %v243_v55  ;;  %v255_v10 = vadd.f32 %v1033_v52, %v245_v58 }
 0x147   :  { %v170_v2 = vpop.permute.xlu1 %169  ;;  %v166_v3 = vpop.permute.xlu0 %165 }
 0x148   :  { %v244_v4 = vmax.f32 %v228_v57, %v236_v62  ;;  %v232_v5 = vadd.f32 %v218_v59, %v170_v2  ;;  %v231_v6 = vadd.f32 %v218_v59, %v166_v3  ;;  %v246_v8 = vmax.f32 %v230_v56, %v238_v61 }
 0x149   :  { %v262_v9 = vsel %vm261_vm5, %v253_v63, -inf  ;;  %v268_v22 = vsel %vm261_vm5, %v255_v10, -inf }
 0x14a   :  { %v240_v11 = vmul.f32 0.01, %v232_v5  ;;  %v239_v12 = vmul.f32 0.01, %v231_v6  ;;  %263 = vmax.xlane.f32.xlu0 %v262_v9  ;;  %v254_v14 = vadd.f32 %v1036_v60, %v244_v4  ;;  %v256_v24 = vadd.f32 %v1036_v60, %v246_v8 }
 0x14b   :  { %v181_v15 = vpop.permute.xlu1 %180  ;;  %v177_v16 = vpop.permute.xlu0 %176 }
 0x14c   :  { %v247_v17 = vmax.f32 %v231_v6, %v239_v12  ;;  %v234_v18 = vadd.f32 %v222_v13, %v181_v15  ;;  %v233_v19 = vadd.f32 %v222_v13, %v177_v16  ;;  %v248_v20 = vmax.f32 %v232_v5, %v240_v11 }
 0x14d   :  { %v265_v21 = vsel %vm261_vm5, %v254_v14, -inf  ;;  %v271_v31 = vsel %vm261_vm5, %v256_v24, -inf }
 0x14e   :  { %v242_v25 = vmul.f32 0.01, %v234_v18  ;;  %v241_v26 = vmul.f32 0.01, %v233_v19  ;;  %266 = vmax.xlane.f32.xlu1 %v265_v21  ;;  %269 = vmax.xlane.f32.xlu0 %v268_v22  ;;  %v257_v27 = vadd.f32 %v1033_v52, %v247_v17  ;;  %v258_v32 = vadd.f32 %v1036_v60, %v248_v20 }
 0x150   :  { %v249_v28 = vmax.f32 %v233_v19, %v241_v26  ;;  %v274_v29 = vsel %vm261_vm5, %v257_v27, -inf  ;;  %v250_v30 = vmax.f32 %v234_v18, %v242_v25  ;;  %v277_v35 = vsel %vm261_vm5, %v258_v32, -inf }
 0x152   :  { %275 = vmax.xlane.f32.xlu1 %v274_v29  ;;  %272 = vmax.xlane.f32.xlu0 %v271_v31  ;;  %v259_v33 = vadd.f32 %v1033_v52, %v249_v28  ;;  %v260_v36 = vadd.f32 %v1036_v60, %v250_v30 }
 0x154   :  { %v280_v34 = vsel %vm261_vm5, %v259_v33, -inf  ;;  %v283_v38 = vsel %vm261_vm5, %v260_v36, -inf }
 0x156   :  { %281 = vmax.xlane.f32.xlu1 %v280_v34  ;;  %278 = vmax.xlane.f32.xlu0 %v277_v35 }
 0x15a   :  { %284 = vmax.xlane.f32.xlu0 %v283_v38 }
 0x167   :  { %399 = vrot.lane.b32.xlu1 %v1020_v23, %s949_s5 }
 0x1d3   :  { %v264_v39 = vpop.xlane.xlu0 %263 }
 0x1d4   :  { %v286_v40 = vsub.f32 %v253_v63, %v264_v39 }
 0x1d6   :  { %v294_v41 = vmul.f32 1.442695, %v286_v40 }
 0x1d7   :  { %v267_v42 = vpop.xlane.xlu1 %266  ;;  %v270_v43 = vpop.xlane.xlu0 %269 }
 0x1d8   :  { %879 = vpow2.f32 %v294_v41  ;;  %v287_v44 = vsub.f32 %v254_v14, %v267_v42  ;;  %v288_v45 = vsub.f32 %v255_v10, %v270_v43 }
 0x1da   :  { %v296_v46 = vmul.f32 1.442695, %v287_v44  ;;  %v298_v47 = vmul.f32 1.442695, %v288_v45 }
 0x1db   :  { %v276_v48 = vpop.xlane.xlu1 %275  ;;  %v273_v49 = vpop.xlane.xlu0 %272 }
 0x1dc   :  { %881 = vpow2.f32 %v296_v46  ;;  %v290_v50 = vsub.f32 %v257_v27, %v276_v48  ;;  %v289_v51 = vsub.f32 %v256_v24, %v273_v49 }
 0x1dd   :  { %883 = vpow2.f32 %v298_v47 }
 0x1de   :  { %v302_v53 = vmul.f32 1.442695, %v290_v50  ;;  %v300_v54 = vmul.f32 1.442695, %v289_v51  ;;  %v877_v51 = vld [vmem:[%s1109_s3 + $0x8] sm:$0xff]  }
 0x1df   :  { %v282_v55 = vpop.xlane.xlu1 %281  ;;  %v279_v56 = vpop.xlane.xlu0 %278 }
 0x1e0   :  { %885 = vpow2.f32 %v302_v53  ;;  %v292_v57 = vsub.f32 %v259_v33, %v282_v55  ;;  %v291_v58 = vsub.f32 %v258_v32, %v279_v56  ;;  %v878_v53 = vld [vmem:[%s1109_s3] sm:$0xff]  }
 0x1e1   :  { %887 = vpow2.f32 %v300_v54 }
 0x1e2   :  { %v306_v59 = vmul.f32 1.442695, %v292_v57  ;;  %v304_v61 = vmul.f32 1.442695, %v291_v58 }
 0x1e3   :  { %v285_v62 = vpop.xlane.xlu0 %284  ;;  %v400_v63 = vpop.permute.xlu1 %399 }
 0x1e4   :  { %889 = vpow2.f32 %v306_v59  ;;  %v293_v0 = vsub.f32 %v260_v36, %v285_v62  ;;  %829 = vmatpush3.bf16.msra.mxu1 %v400_v63 }
 0x1e5   :  { %v880_v2 = vpop.eup %879  ;;  %891 = vpow2.f32 %v304_v61  ;;  %840 = vmatprep.subr.bf16.mxu1 %v945_v1 }
 0x1e6   :  { %v308_v3 = vmul.f32 1.442695, %v293_v0  ;;  %v310_v4 = vsel %vm261_vm5, %v880_v2, 0.0 }
 0x1e7   :  { %311 = vadd.xlane.f32.xlu1 %v310_v4 }
 0x1e8   :  { %893 = vpow2.f32 %v308_v3 }
 0x1e9   :  { %v882_v5 = vpop.eup %881 }
 0x1ea   :  { %v884_v6 = vpop.eup %883  ;;  %v313_v8 = vsel %vm261_vm5, %v882_v5, 0.0 }
 0x1eb   :  { %314 = vadd.xlane.f32.xlu0 %v313_v8  ;;  %v316_v9 = vsel %vm261_vm5, %v884_v6, 0.0 }
 0x1ec   :  { %317 = vadd.xlane.f32.xlu1 %v316_v9 }
 0x1ed   :  { %v886_v10 = vpop.eup %885 }
 0x1ee   :  { %v888_v11 = vpop.eup %887  ;;  %v322_v12 = vsel %vm261_vm5, %v886_v10, 0.0 }
 0x1ef   :  { %v319_v13 = vsel %vm261_vm5, %v888_v11, 0.0 }
 0x1f0   :  { %323 = vadd.xlane.f32.xlu1 %v322_v12  ;;  %320 = vadd.xlane.f32.xlu0 %v319_v13 }
 0x1f1   :  { %v890_v14 = vpop.eup %889 }
 0x1f2   :  { %v892_v15 = vpop.eup %891  ;;  %v328_v16 = vsel %vm261_vm5, %v890_v14, 0.0 }
 0x1f3   :  { %v325_v17 = vsel %vm261_vm5, %v892_v15, 0.0 }
 0x1f4   :  { %329 = vadd.xlane.f32.xlu1 %v328_v16  ;;  %326 = vadd.xlane.f32.xlu0 %v325_v17 }
 0x1f5   :  { %v894_v18 = vpop.eup %893 }
 0x1f6   :  { %v331_v19 = vsel %vm261_vm5, %v894_v18, 0.0 }
 0x1f8   :  { %332 = vadd.xlane.f32.xlu0 %v331_v19 }
 0x205   :  { %497 = vrot.lane.b32.xlu1 %v1020_v23, %s950_s26 }
 0x20e   :  { %448 = vrot.lane.b32.xlu0 %v1020_v23, %s951_s27 }
 0x270   :  { %v312_v20 = vpop.xlane.xlu1 %311 }
 0x271   :  { %895 = vrcp.f32 %v312_v20 }
 0x274   :  { %v315_v21 = vpop.xlane.xlu0 %314 }
 0x275   :  { %v318_v22 = vpop.xlane.xlu1 %317  ;;  %897 = vrcp.f32 %v315_v21 }
 0x276   :  { %899 = vrcp.f32 %v318_v22 }
 0x279   :  { %v324_v24 = vpop.xlane.xlu1 %323  ;;  %v321_v25 = vpop.xlane.xlu0 %320 }
 0x27a   :  { %901 = vrcp.f32 %v321_v25 }
 0x27b   :  { %903 = vrcp.f32 %v324_v24 }
 0x27d   :  { %v330_v26 = vpop.xlane.xlu1 %329  ;;  %v327_v27 = vpop.xlane.xlu0 %326 }
 0x27e   :  { %905 = vrcp.f32 %v327_v27  ;;  %v896_v28 = vpop.eup %895 }
 0x27f   :  { %907 = vrcp.f32 %v330_v26  ;;  %v342_v31 = vmul.f32 %v896_v28, %v880_v2  ;;  %v562_v28 = vld [vmem:[%s1110_s4] sm:$0x1]  ;;  %s952_s4 = smov [#allocation2]  }
 0x280   :  { %s762_s9 = sshll.u32 %s952_s4, 4  ;;  %s763_s9 = int_to_ptr.vmem [resolvable:$true] %s762_s9 }
 0x281   :  { %v333_v29 = vpop.xlane.xlu0 %332  ;;  %v498_v43 = vpop.permute.xlu1 %497  ;;  %s923_s10 = scalar_lea.vmem %s763_s9, 256  ;;  %p928_p1 = scmp.lt.s32.totalorder %s763_s9, %s763_s9 }
 0x282   :  { %v898_v30 = vpop.eup %897  ;;  %909 = vrcp.f32 %v333_v29  ;;  %p924_p0 = scmp.ne.s32.totalorder %s763_s9, %s923_s10  ;;  %p929_p2 = scmp.lt.s32.totalorder %s923_s10, %s923_s10 }
 0x283   :  { %v343_v23 = vmul.f32 %v898_v30, %v882_v5  ;;  %v900_v33 = vpop.eup %899 }
 0x284   :  { %v344_v36 = vmul.f32 %v900_v33, %v884_v6  ;;  %p930_p3 = por %p929_p2, %p928_p1 }
 0x285   :  { %v350_v32 = vpack.c.bf16 %v343_v23, %v342_v31  ;;  %v449_v34 = vpop.permute.xlu0 %448 }
 0x286   :  { %p931_p4 = pnand %p930_p3, %p924_p0 }
 0x287   :  { %825 = vmatmul.mubr.msk.bf16.vlgmr.msra.gmra.mxu0 %vm261_vm5, %v350_v32  ;;  %v902_v35 = vpop.eup %901  ;;  %v667_v32 = vsub.s32 1, %v1014_v7 }
 0x288   :  { %835 = vmatpush3.bf16.msra.mxu0 %v449_v34  ;;  %836 = vmatprep.mubr.msk.bf16.mxu0 %vm946_vm1, %v945_v1  ;;  %v345_v38 = vmul.f32 %v902_v35, %v888_v11  ;;  %v904_v39 = vpop.eup %903 }
 0x289   :  { %846 = vmatprep.subr.bf16.mxu0 %v945_v1  ;;  %v346_v44 = vmul.f32 %v904_v39, %v886_v10 }
 0x28a   :  { %v351_v40 = vpack.c.bf16 %v345_v38, %v344_v36 }
 0x28b   :  { %v906_v41 = vpop.eup %905 }
 0x28c   :  { %v908_v42 = vpop.eup %907  ;;  %831 = vmatmul.mubr.msk.bf16.vlgmr.msra.gmra.mxu1 %vm261_vm5, %v351_v40  ;;  %v347_v45 = vmul.f32 %v906_v41, %v892_v15 }
 0x28d   :  { %841 = vmatpush3.bf16.msra.mxu1 %v498_v43  ;;  %842 = vmatprep.mubr.msk.bf16.mxu1 %vm946_vm1, %v945_v1  ;;  %v348_v48 = vmul.f32 %v908_v42, %v890_v14 }
 0x28e   :  { %v352_v47 = vpack.c.bf16 %v347_v45, %v346_v44  ;;  %854 = vmatprep.subr.bf16.mxu1 %v945_v1 }
 0x28f   :  { %v910_v46 = vpop.eup %909 }
 0x290   :  { %v349_v49 = vmul.f32 %v910_v46, %v894_v18  ;;  %837 = vmatmul.mubr.msk.bf16.vlgmr.msra.gmra.mxu0 %vm261_vm5, %v352_v47 }
 0x291   :  { %850 = vmatprep.mubr.msk.bf16.mxu0 %vm946_vm1, %v945_v1  ;;  %847 = vmatpush3.bf16.msra.mxu0 %v877_v51 }
 0x292   :  { %v353_v50 = vpack.c.bf16 %v349_v49, %v348_v48  ;;  %848 = vmatprep.subr.bf16.mxu0 %v945_v1 }
 0x294   :  { %843 = vmatmul.mubr.msk.bf16.vlgmr.msra.gmra.mxu1 %vm261_vm5, %v353_v50 }
 0x295   :  { %856 = vmatprep.mubr.msk.bf16.mxu1 %vm946_vm1, %v945_v1  ;;  %849 = vmatpush3.bf16.msra.mxu0 %v878_v53 }
 0x296   :  { %860 = vmatprep.subr.bf16.mxu0 %v945_v1 }
 0x347   :  { %v391_v54 = vpop.f32.mrf.mxu0 }
 0x349   :  { %v826_v55 = vpop.f32.mrf.mxu0 }
 0x34b   :  { %v394_v56 = vpop.f32.mrf.mxu0 }
 0x34c   :  { %v439_v57 = vpop.f32.mrf.mxu1 }
 0x34d   :  { %v827_v58 = vpop.f32.mrf.mxu0  ;;  %v446_v63 = vmax.f32 %v391_v54, %v439_v57 }
 0x34e   :  { %v832_v59 = vpop.f32.mrf.mxu1 }
 0x350   :  { %v442_v61 = vpop.f32.mrf.mxu1  ;;  %v488_v62 = vpop.f32.mrf.mxu0 }
 0x351   :  { %v495_v3 = vmax.f32 %v446_v63, %v488_v62  ;;  %v447_v6 = vmax.f32 %v394_v56, %v442_v61 }
 0x352   :  { %v833_v0 = vpop.f32.mrf.mxu1  ;;  %v838_v2 = vpop.f32.mrf.mxu0 }
 0x354   :  { %v491_v4 = vpop.f32.mrf.mxu0  ;;  %v537_v5 = vpop.f32.mrf.mxu1 }
 0x355   :  { %v544_v8 = vmax.f32 %v495_v3, %v537_v5  ;;  %v496_v11 = vmax.f32 %v447_v6, %v491_v4 }
 0x356   :  { %v839_v9 = vpop.f32.mrf.mxu0  ;;  %v844_v10 = vpop.f32.mrf.mxu1 }
 0x357   :  { %v548_v12 = vmin.f32 %v544_v8, 0.0  ;;  %vm546_vm6 = vcmp.gt.f32.partialorder %v544_v8, 0.0 }
 0x358   :  { %v540_v13 = vpop.f32.mrf.mxu1 }
 0x359   :  { %v550_v14 = vmul.f32 1.442695, %v548_v12  ;;  %v545_v15 = vmax.f32 %v496_v11, %v540_v13 }
 0x35a   :  { %v845_v16 = vpop.f32.mrf.mxu1 }
 0x35b   :  { %911 = vpow2.f32 %v550_v14  ;;  %v549_v17 = vmin.f32 %v545_v15, 0.0  ;;  %vm547_vm7 = vcmp.gt.f32.partialorder %v545_v15, 0.0 }
 0x35d   :  { %v552_v18 = vmul.f32 1.442695, %v549_v17 }
 0x35f   :  { %913 = vpow2.f32 %v552_v18 }
 0x368   :  { %v912_v19 = vpop.eup %911 }
 0x369   :  { %v780_v20 = vadd.f32 -1.0, %v912_v19 }
 0x36b   :  { %v556_v24 = vsel %vm546_vm6, %v544_v8, %v780_v20 }
 0x36c   :  { %v914_v21 = vpop.eup %913 }
 0x36d   :  { %v781_v22 = vadd.f32 -1.0, %v914_v21 }
 0x36f   :  { %v557_v25 = vsel %vm547_vm7, %v545_v15, %v781_v22 }
 0x370   :  { %v563_v26 = vpack.c.bf16 %v557_v25, %v556_v24 }
 0x372   :  { %851 = vmatmul.mubr.msk.bf16.vlgmr.msra.gmra.mxu0 %vm576_vm8, %v563_v26  ;;  %v578_v27 = vsel %vm576_vm8, %v563_v26, 0 }
 0x373   :  { %855 = vmatpush3.bf16.xpose.msra.mxu1 %v578_v27  ;;  %862 = vmatprep.mubr.msk.bf16.mxu0 %vm946_vm1, %v945_v1 }
 0x37a   :  { %857 = vmatmul.mubr.msk.bf16.vlgmr.msra.gmra.mxu1 %vm576_vm8, %v562_v28 }
 0x432   :  { %v614_v29 = vpop.f32.mrf.mxu0 }
 0x434   :  { %v852_v30 = vpop.f32.mrf.mxu0 }
 0x436   :  { %v617_v31 = vpop.f32.mrf.mxu0 }
 0x437   :  { %v621_v23 = vpack.c.bf16 %v617_v31, %v614_v29 }
 0x438   :  { %v853_v33 = vpop.f32.mrf.mxu0 }
 0x439   :  { %861 = vmatpush3.bf16.msra.mxu0 %v621_v23 }
 0x43a   :  { %v659_v34 = vpop.f32.mrf.mxu1 }
 0x43b   :  { %v668_v35 = vrot.slane %v659_v34, %v667_v32  ;;  %v679_v39 = vrot.slane %v659_v34, %v1029_v37 }
 0x43c   :  { %v858_v36 = vpop.f32.mrf.mxu1 }
 0x43d   :  { %674 = vbcast.lane.b32.xlu0 %v668_v35, 264  ;;  %670 = vbcast.lane.b32.xlu1 %v668_v35, 256 }
 0x43e   :  { %v662_v38 = vpop.f32.mrf.mxu1 }
 0x440   :  { %v859_v1 = vpop.f32.mrf.mxu1 }
 0x4af   :  { %v675_v40 = vpop.permute.xlu0 %674  ;;  %v671_v41 = vpop.permute.xlu1 %670 }
 0x4b0   :  { %v681_v42 = vadd.f32 %v679_v39, %v675_v40  ;;  %v680_v43 = vadd.f32 %v679_v39, %v671_v41 }
 0x4b2   :  { %v683_v44 = vmul.f32 0.01, %v681_v42  ;;  %v682_v45 = vmul.f32 0.01, %v680_v43 }
 0x4b4   :  { %v685_v46 = vmax.f32 %v681_v42, %v683_v44  ;;  %v684_v47 = vmax.f32 %v680_v43, %v682_v45 }
 0x4b6   :  { %v687_v7 = vadd.f32 %v685_v46, %v1036_v60  ;;  %v686_v48 = vadd.f32 %v684_v47, %v1033_v52 }
 0x4b8   :  { %v691_v49 = vsel %vm261_vm5, %v687_v7, -inf  ;;  %v688_v50 = vsel %vm261_vm5, %v686_v48, -inf }
 0x4b9   :  { %692 = vmax.xlane.f32.xlu0 %v691_v49  ;;  %689 = vmax.xlane.f32.xlu1 %v688_v50 }
 0x542   :  { %v693_v51 = vpop.xlane.xlu0 %692  ;;  %v690_v37 = vpop.xlane.xlu1 %689 }
 0x543   :  { %v695_v53 = vsub.f32 %v687_v7, %v693_v51  ;;  %v694_v54 = vsub.f32 %v686_v48, %v690_v37 }
 0x545   :  { %v698_v55 = vmul.f32 1.442695, %v695_v53  ;;  %v696_v56 = vmul.f32 1.442695, %v694_v54 }
 0x547   :  { %915 = vpow2.f32 %v698_v55 }
 0x548   :  { %917 = vpow2.f32 %v696_v56 }
 0x554   :  { %v916_v57 = vpop.eup %915 }
 0x555   :  { %v918_v58 = vpop.eup %917  ;;  %v703_v60 = vsel %vm261_vm5, %v916_v57, 0.0 }
 0x556   :  { %704 = vadd.xlane.f32.xlu1 %v703_v60  ;;  %v700_v52 = vsel %vm261_vm5, %v918_v58, 0.0 }
 0x557   :  { %701 = vadd.xlane.f32.xlu0 %v700_v52 }
 0x5df   :  { %v705_v59 = vpop.xlane.xlu1 %704 }
 0x5e0   :  { %v702_v61 = vpop.xlane.xlu0 %701  ;;  %919 = vrcp.f32 %v705_v59 }
 0x5e1   :  { %921 = vrcp.f32 %v702_v61 }
 0x5ed   :  { %v920_v62 = vpop.eup %919 }
 0x5ee   :  { %v922_v63 = vpop.eup %921  ;;  %v709_v0 = vmul.f32 %v920_v62, %v916_v57 }
 0x5ef   :  { %v708_v2 = vmul.f32 %v922_v63, %v918_v58 }
 0x5f1   :  { %v710_v3 = vpack.c.bf16 %v709_v0, %v708_v2 }
 0x5f3   :  { %863 = vmatmul.mubr.msk.bf16.vlgmr.msra.gmra.mxu0 %vm261_vm5, %v710_v3 }
 0x6b3   :  { %v748_v4 = vpop.f32.mrf.mxu0 }
 0x6b4   :  { %755 = vst [vmem:[#allocation2] sm:$0xff] %v748_v4 }
 0x6b5   :  { %v864_v5 = vpop.f32.mrf.mxu0 }
 0x6b7   :  { %v751_v6 = vpop.f32.mrf.mxu0 }
 0x6b8   :  { %756 = vst [vmem:[#allocation2 + $0x8] sm:$0xff] %v751_v6 }
 0x6b9   :  { %v865_v8 = vpop.f32.mrf.mxu0 }
 0x6ba   :  { %934 = shalt.err (!%p931_p4)
}
 0x6bb   :  { %s953_s11 = smov 128   ;;  %s954_s12 = smov 8  }
 0x6bc   :  { %768 = dma.vmem_to_hbm [thread:$0]  %s763_s9, 256, %s1112_s6, [#allocation3], %s953_s11, %s953_s11, %s954_s12  }
 0x6bd   :  { %943 = dma.done.wait [#allocation3], 256  }
 0x6be   :  { %944 = vsyncadd [#allocation3], 4294967040 }
 0x6bf   :  { %772 = vsyncpa [#allocation3], 1 }

</bundles_post_ra>
